<compile_context>
chip_gen: v7x
topology: tpu7x:2x2x1
jax: 0.10.0
libtpu: 0.0.40
codegen_flags: <defaults>
</compile_context>

<pallas_src>
import jax
import jax.numpy as jnp
from jax.experimental import pallas as pl
from jax.experimental.pallas import tpu as pltpu


def _round_up(x, m):
    return ((x + m - 1) // m) * m


def _fused_mlp_kernel(x_ref, *refs):
    """Fused MLP on one (batch_tile, F0_pad) activation tile.

    refs layout: (w0, b0, w1, b1, ..., w_{L-1}, b_{L-1}, o_ref)
    All feature dims are zero-padded to multiples of 128 (lane-dense).
    """
    o_ref = refs[-1]
    param_refs = refs[:-1]
    n_layers = len(param_refs) // 2

    x = x_ref[...]  # f32, no redundant casts
    for li in range(n_layers):
        w = param_refs[2 * li][...]        # (F_in_pad, F_out_pad)
        b = param_refs[2 * li + 1][...]    # (1, F_out_pad), broadcast once/layer
        y = jnp.dot(x, w, preferred_element_type=jnp.float32) + b
        # sigmoid = 1 / (1 + exp(-y)); exp and approx reciprocal both run on
        # the EUP slot, keeping the VPU free.
        x = pl.reciprocal(1.0 + jnp.exp(-y), approx=True)
    o_ref[...] = x


def fused_mlp_forward(x, padded_params, *, batch_tile=None):
    """Run the fused MLP.

    x:             (B, F0_pad) float32, feature axis already lane-padded.
    padded_params: list of (W_pad (F_in_pad, F_out_pad), b_pad (1, F_out_pad)).
    Returns (B, F_out_pad) float32.
    """
    B, f0 = x.shape
    f_out = padded_params[-1][0].shape[1]

    if batch_tile is None:
        # Largest-reasonable tile: up to 512 rows per grid step, 8-aligned.
        batch_tile = min(512, _round_up(B, 8))
    batch_tile = _round_up(batch_tile, 8)
    b_pad = _round_up(B, batch_tile)
    if b_pad != B:
        x = jnp.pad(x, ((0, b_pad - B), (0, 0)))

    flat_params = []
    in_specs = [pl.BlockSpec((batch_tile, f0), lambda i: (i, 0))]
    for w, b in padded_params:
        flat_params.append(w)
        flat_params.append(b)
        # Weights / biases: full arrays, resident across all grid steps.
        in_specs.append(pl.BlockSpec(w.shape, lambda i: (0, 0)))
        in_specs.append(pl.BlockSpec(b.shape, lambda i: (0, 0)))

    out = pl.pallas_call(
        _fused_mlp_kernel,
        out_shape=jax.ShapeDtypeStruct((b_pad, f_out), jnp.float32),
        grid_spec=pltpu.PrefetchScalarGridSpec(
            num_scalar_prefetch=0,
            grid=(b_pad // batch_tile,),
            in_specs=in_specs,
            out_specs=pl.BlockSpec((batch_tile, f_out), lambda i: (i, 0)),
        ),
        compiler_params=pltpu.CompilerParams(
            dimension_semantics=("parallel",),
        ),
    )(x, *flat_params)
    return out[:B]


class NetworkSigPallas:
    """JAX/Pallas port of Network_sig. Parameters built deterministically."""

    def __init__(self, n_cont, out_sz, layers, p=0.4, key=None):
        if key is None:
            key = jax.random.PRNGKey(42)
        self.p = p            # dropout prob (identity at inference)
        self.out_sz = out_sz
        dims = [n_cont] + list(layers) + [out_sz]
        self.in_pad = _round_up(dims[0], 128)

        self.raw_params = []     # un-padded (W_t, b), used by the JAX reference
        self.padded_params = []  # lane-dense (W_pad, b_pad) fed to the kernel
        for d_in, d_out in zip(dims[:-1], dims[1:]):
            key, wk, bk = jax.random.split(key, 3)
            # deterministic "Kaiming-uniform-like" init, same shapes as nn.Linear
            bound = 1.0 / float(d_in) ** 0.5
            w = jax.random.uniform(wk, (d_out, d_in), jnp.float32, -bound, bound)
            bias = jax.random.uniform(bk, (d_out,), jnp.float32, -bound, bound)
            w_t = jnp.asarray(w.T)                       # (d_in, d_out)
            self.raw_params.append((w_t, bias))

            p_in, p_out = _round_up(d_in, 128), _round_up(d_out, 128)
            w_pad = jnp.zeros((p_in, p_out), jnp.float32).at[:d_in, :d_out].set(w_t)
            b_pad = jnp.zeros((1, p_out), jnp.float32).at[0, :d_out].set(bias)
            self.padded_params.append((w_pad, b_pad))

    def __call__(self, x_cont):
        # torch.cat([x_cont], 1) is a no-op
        B, n_cont = x_cont.shape
        x = jnp.pad(x_cont.astype(jnp.float32),
                    ((0, 0), (0, self.in_pad - n_cont)))
        y = fused_mlp_forward(x, self.padded_params)
        return y[:, : self.out_sz]

    def reference(self, x_cont):
        """Pure-JAX reference of the same forward (for correctness checks)."""
        x = x_cont.astype(jnp.float32)
        for w_t, b in self.raw_params:
            x = jax.nn.sigmoid(x @ w_t + b)
        return x


if __name__ == "__main__":
    # Small shapes consistent with the module's forward: x_cont is (batch, n_cont)
    batch = 8
    n_cont = 16
    layers = [32, 16]
    out_sz = 4

    key = jax.random.PRNGKey(0)
    x_cont = jax.random.normal(key, (batch, n_cont), dtype=jnp.float32)

    model = NetworkSigPallas(n_cont, out_sz, layers, p=0.4)
    out = jax.block_until_ready(model(x_cont))

    assert out.shape == (batch, out_sz), out.shape
    assert bool(jnp.all(jnp.isfinite(out)))

    ref = model.reference(x_cont)
    max_err = float(jnp.max(jnp.abs(out - ref)))
    assert bool(jnp.allclose(out, ref, atol=1e-2, rtol=1e-2)), max_err
    print("KERNEL_OK")
</pallas_src>

<mosaic_0001>
module attributes {stable_mosaic.version = 11 : i64} {
  func.func @_fused_mlp_kernel(%arg0: i32, %arg1: memref<8x128xf32, #tpu.memory_space<vmem>>, %arg2: memref<128x128xf32, #tpu.memory_space<vmem>>, %arg3: memref<1x128xf32, #tpu.memory_space<vmem>>, %arg4: memref<128x128xf32, #tpu.memory_space<vmem>>, %arg5: memref<1x128xf32, #tpu.memory_space<vmem>>, %arg6: memref<128x128xf32, #tpu.memory_space<vmem>>, %arg7: memref<1x128xf32, #tpu.memory_space<vmem>>, %arg8: memref<8x128xf32, #tpu.memory_space<vmem>>) attributes {dimension_semantics = [#tpu.dimension_semantics<parallel>], iteration_bounds = array<i64: 1>, scalar_prefetch = 0 : i64, scratch_operands = 0 : i64, tpu.core_type = #tpu.core_type<tc>, window_params = [{transform_indices = @transform_0, window_bounds = array<i64: 8, 128>}, {pipeline_mode = #tpu.pipeline_mode<synchronous>, transform_indices = @transform_1, window_bounds = array<i64: 128, 128>}, {pipeline_mode = #tpu.pipeline_mode<synchronous>, transform_indices = @transform_2, window_bounds = array<i64: 1, 128>}, {pipeline_mode = #tpu.pipeline_mode<synchronous>, transform_indices = @transform_3, window_bounds = array<i64: 128, 128>}, {pipeline_mode = #tpu.pipeline_mode<synchronous>, transform_indices = @transform_4, window_bounds = array<i64: 1, 128>}, {pipeline_mode = #tpu.pipeline_mode<synchronous>, transform_indices = @transform_5, window_bounds = array<i64: 128, 128>}, {pipeline_mode = #tpu.pipeline_mode<synchronous>, transform_indices = @transform_6, window_bounds = array<i64: 1, 128>}, {transform_indices = @transform_7, window_bounds = array<i64: 8, 128>}]} {
    %c0 = arith.constant 0 : index
    %c0_0 = arith.constant 0 : index
    %0 = vector.load %arg1[%c0, %c0_0] : memref<8x128xf32, #tpu.memory_space<vmem>>, vector<8x128xf32>
    %c0_1 = arith.constant 0 : index
    %c0_2 = arith.constant 0 : index
    %1 = vector.load %arg2[%c0_1, %c0_2] : memref<128x128xf32, #tpu.memory_space<vmem>>, vector<128x128xf32>
    %c0_3 = arith.constant 0 : index
    %c0_4 = arith.constant 0 : index
    %2 = vector.load %arg3[%c0_3, %c0_4] : memref<1x128xf32, #tpu.memory_space<vmem>>, vector<1x128xf32>
    %cst = arith.constant dense<0.000000e+00> : vector<8x128xf32>
    %3 = tpu.matmul %0, %1, %cst {dimension_numbers = #tpu.dot_dimension_numbers<[1], [0], [0], [1], [0, 0, 1, 1], [], []>} : vector<8x128xf32>, vector<128x128xf32>, vector<8x128xf32> -> vector<8x128xf32>
    %4 = vector.broadcast %2 : vector<1x128xf32> to vector<8x128xf32>
    %5 = arith.addf %3, %4 : vector<8x128xf32>
    %cst_5 = arith.constant 0.000000e+00 : f32
    %6 = vector.broadcast %cst_5 : f32 to vector<8x128xf32>
    %7 = arith.subf %6, %5 : vector<8x128xf32>
    %8 = math.exp %7 : vector<8x128xf32>
    %cst_6 = arith.constant 1.000000e+00 : f32
    %9 = vector.broadcast %cst_6 : f32 to vector<8x128xf32>
    %10 = arith.addf %9, %8 : vector<8x128xf32>
    %11 = tpu.reciprocal %10 {approx = true} : vector<8x128xf32> -> vector<8x128xf32>
    %c0_7 = arith.constant 0 : index
    %c0_8 = arith.constant 0 : index
    %12 = vector.load %arg4[%c0_7, %c0_8] : memref<128x128xf32, #tpu.memory_space<vmem>>, vector<128x128xf32>
    %c0_9 = arith.constant 0 : index
    %c0_10 = arith.constant 0 : index
    %13 = vector.load %arg5[%c0_9, %c0_10] : memref<1x128xf32, #tpu.memory_space<vmem>>, vector<1x128xf32>
    %cst_11 = arith.constant dense<0.000000e+00> : vector<8x128xf32>
    %14 = tpu.matmul %11, %12, %cst_11 {dimension_numbers = #tpu.dot_dimension_numbers<[1], [0], [0], [1], [0, 0, 1, 1], [], []>} : vector<8x128xf32>, vector<128x128xf32>, vector<8x128xf32> -> vector<8x128xf32>
    %15 = vector.broadcast %13 : vector<1x128xf32> to vector<8x128xf32>
    %16 = arith.addf %14, %15 : vector<8x128xf32>
    %cst_12 = arith.constant 0.000000e+00 : f32
    %17 = vector.broadcast %cst_12 : f32 to vector<8x128xf32>
    %18 = arith.subf %17, %16 : vector<8x128xf32>
    %19 = math.exp %18 : vector<8x128xf32>
    %cst_13 = arith.constant 1.000000e+00 : f32
    %20 = vector.broadcast %cst_13 : f32 to vector<8x128xf32>
    %21 = arith.addf %20, %19 : vector<8x128xf32>
    %22 = tpu.reciprocal %21 {approx = true} : vector<8x128xf32> -> vector<8x128xf32>
    %c0_14 = arith.constant 0 : index
    %c0_15 = arith.constant 0 : index
    %23 = vector.load %arg6[%c0_14, %c0_15] : memref<128x128xf32, #tpu.memory_space<vmem>>, vector<128x128xf32>
    %c0_16 = arith.constant 0 : index
    %c0_17 = arith.constant 0 : index
    %24 = vector.load %arg7[%c0_16, %c0_17] : memref<1x128xf32, #tpu.memory_space<vmem>>, vector<1x128xf32>
    %cst_18 = arith.constant dense<0.000000e+00> : vector<8x128xf32>
    %25 = tpu.matmul %22, %23, %cst_18 {dimension_numbers = #tpu.dot_dimension_numbers<[1], [0], [0], [1], [0, 0, 1, 1], [], []>} : vector<8x128xf32>, vector<128x128xf32>, vector<8x128xf32> -> vector<8x128xf32>
    %26 = vector.broadcast %24 : vector<1x128xf32> to vector<8x128xf32>
    %27 = arith.addf %25, %26 : vector<8x128xf32>
    %cst_19 = arith.constant 0.000000e+00 : f32
    %28 = vector.broadcast %cst_19 : f32 to vector<8x128xf32>
    %29 = arith.subf %28, %27 : vector<8x128xf32>
    %30 = math.exp %29 : vector<8x128xf32>
    %cst_20 = arith.constant 1.000000e+00 : f32
    %31 = vector.broadcast %cst_20 : f32 to vector<8x128xf32>
    %32 = arith.addf %31, %30 : vector<8x128xf32>
    %33 = tpu.reciprocal %32 {approx = true} : vector<8x128xf32> -> vector<8x128xf32>
    %c0_21 = arith.constant 0 : index
    %c0_22 = arith.constant 0 : index
    %34 = vector.load %arg8[%c0_21, %c0_22] : memref<8x128xf32, #tpu.memory_space<vmem>>, vector<8x128xf32>
    tpu.vector_store %arg8[%c0_21, %c0_22], %33 {strides = array<i32>} : memref<8x128xf32, #tpu.memory_space<vmem>>, vector<8x128xf32>,
    return
  }
  func.func @transform_0(%arg0: i32) -> (i32, i32) {
    %c0_i32 = arith.constant 0 : i32
    %c0_i32_0 = arith.constant 0 : i32
    return %arg0, %c0_i32 : i32, i32
  }
  func.func @transform_1(%arg0: i32) -> (i32, i32) {
    %c0_i32 = arith.constant 0 : i32
    %c0_i32_0 = arith.constant 0 : i32
    %c0_i32_1 = arith.constant 0 : i32
    return %c0_i32, %c0_i32_0 : i32, i32
  }
  func.func @transform_2(%arg0: i32) -> (i32, i32) {
    %c0_i32 = arith.constant 0 : i32
    %c0_i32_0 = arith.constant 0 : i32
    %c0_i32_1 = arith.constant 0 : i32
    return %c0_i32, %c0_i32_0 : i32, i32
  }
  func.func @transform_3(%arg0: i32) -> (i32, i32) {
    %c0_i32 = arith.constant 0 : i32
    %c0_i32_0 = arith.constant 0 : i32
    %c0_i32_1 = arith.constant 0 : i32
    return %c0_i32, %c0_i32_0 : i32, i32
  }
  func.func @transform_4(%arg0: i32) -> (i32, i32) {
    %c0_i32 = arith.constant 0 : i32
    %c0_i32_0 = arith.constant 0 : i32
    %c0_i32_1 = arith.constant 0 : i32
    return %c0_i32, %c0_i32_0 : i32, i32
  }
  func.func @transform_5(%arg0: i32) -> (i32, i32) {
    %c0_i32 = arith.constant 0 : i32
    %c0_i32_0 = arith.constant 0 : i32
    %c0_i32_1 = arith.constant 0 : i32
    return %c0_i32, %c0_i32_0 : i32, i32
  }
  func.func @transform_6(%arg0: i32) -> (i32, i32) {
    %c0_i32 = arith.constant 0 : i32
    %c0_i32_0 = arith.constant 0 : i32
    %c0_i32_1 = arith.constant 0 : i32
    return %c0_i32, %c0_i32_0 : i32, i32
  }
  func.func @transform_7(%arg0: i32) -> (i32, i32) {
    %c0_i32 = arith.constant 0 : i32
    %c0_i32_0 = arith.constant 0 : i32
    return %arg0, %c0_i32 : i32, i32
  }
}

</mosaic_0001>

<bundles_post_ra>
// kernel: tpu_custom_call.1
= control target key start
LH: loop header
LB: loop body
LE: loop exit
PB: predicated region body
PF: predicated region fallthrough
CT: control target
= control target key end

     0   :  { %12 = vsyncpa [#allocation3], 0  ;;  %s919_s0 = inlined_call_operand.hbm [shape: f32[8,128], index: 0, kind: input, shape index: {}]   ;;  %s920_s1 = inlined_call_operand.hbm [shape: f32[128,128], index: 1, kind: input, shape index: {}]   ;;  %s921_s2 = inlined_call_operand.vmem [shape: f32[1,128], index: 2, kind: input, shape index: {}]   ;;  %s922_s3 = inlined_call_operand.hbm [shape: f32[128,128], index: 3, kind: input, shape index: {}]   ;;  %s923_s4 = inlined_call_operand.vmem [shape: f32[1,128], index: 4, kind: input, shape index: {}]   ;;  %s924_s5 = inlined_call_operand.hbm [shape: f32[128,128], index: 5, kind: input, shape index: {}]   ;;  %s925_s6 = inlined_call_operand.vmem [shape: f32[1,128], index: 6, kind: input, shape index: {}]   ;;  %s926_s7 = inlined_call_operand.hbm [shape: f32[8,128], index: 7, kind: output, shape index: {}]  }
   0x1   :  { %13 = vsyncpa [#allocation6], 0 }
   0x2   :  { %14 = vsyncpa [#allocation9], 0 }
   0x3   :  { %15 = vsyncpa [#allocation4], 0  ;;  %s764_s24 = smov [#allocation5]   ;;  %s646_s28 = scalar_lea.hbm %s920_s1, 2048 }
   0x4   :  { %s31_s25 = sshll.u32 %s764_s24, 4  ;;  %p647_p0 = scmp.ne.s32.totalorder %s920_s1, %s646_s28  ;;  %s32_s25 = int_to_ptr.vmem [resolvable:$true] %s31_s25 }
   0x5   :  { %p650_p1 = scmp.lt.u32.totalorder %s646_s28, %s920_s1 }
   0x7   :  { %p652_p2 = pnand %p650_p1, %p647_p0 }
   0x9   :  { %655 = shalt.err (!%p652_p2)
}
   0xa   :  { %s656_s10 = scalar_lea.vmem %s32_s25, 2048  ;;  %p661_p4 = scmp.lt.s32.totalorder %s32_s25, %s32_s25 }
   0xb   :  { %p657_p3 = scmp.ne.s32.totalorder %s32_s25, %s656_s10  ;;  %p662_p5 = scmp.lt.s32.totalorder %s656_s10, %s656_s10 }
   0xd   :  { %p663_p6 = por %p662_p5, %p661_p4 }
   0xf   :  { %p664_p7 = pnand %p663_p6, %p657_p3 }
  0x11   :  { %667 = shalt.err (!%p664_p7)
}
  0x12   :  { %s765_s11 = smov 128   ;;  %s766_s12 = smov 8  }
  0x13   :  { %37 = dma.hbm_to_vmem [thread:$0]  %s920_s1, 2048, %s32_s25, [#allocation6], %s765_s11, %s765_s11, %s766_s12  }
  0x14   :  { %s767_s15 = smov [#allocation2]   ;;  %s768_s17 = smov [#allocation7]  }
  0x15   :  { %s22_s16 = sshll.u32 %s767_s15, 4  ;;  %s45_s18 = sshll.u32 %s768_s17, 4  ;;  %s23_s16 = int_to_ptr.vmem [resolvable:$true] %s22_s16  ;;  %s46_s18 = int_to_ptr.vmem [resolvable:$true] %s45_s18 }
  0x16   :  { %s668_s21 = scalar_lea.hbm %s919_s0, 128 }
  0x17   :  { %p669_p8 = scmp.ne.s32.totalorder %s919_s0, %s668_s21  ;;  %p672_p9 = scmp.lt.u32.totalorder %s668_s21, %s919_s0 }
  0x19   :  { %p674_p10 = pnand %p672_p9, %p669_p8 }
  0x1b   :  { %677 = shalt.err (!%p674_p10)
}
  0x1c   :  { %s678_s1 = scalar_lea.vmem %s23_s16, 128  ;;  %p683_p12 = scmp.lt.s32.totalorder %s23_s16, %s23_s16 }
  0x1d   :  { %p679_p11 = scmp.ne.s32.totalorder %s23_s16, %s678_s1  ;;  %p684_p13 = scmp.lt.s32.totalorder %s678_s1, %s678_s1 }
  0x1f   :  { %p685_p0 = por %p684_p13, %p683_p12 }
  0x21   :  { %p686_p1 = pnand %p685_p0, %p679_p11 }
  0x23   :  { %689 = shalt.err (!%p686_p1)
}
  0x24   :  { %25 = dma.hbm_to_vmem [thread:$0]  %s919_s0, 128, %s23_s16, [#allocation3]  }
  0x25   :  { %s690_s30 = scalar_lea.hbm %s922_s3, 2048 }
  0x26   :  { %p691_p2 = scmp.ne.s32.totalorder %s922_s3, %s690_s30  ;;  %p694_p3 = scmp.lt.u32.totalorder %s690_s30, %s922_s3 }
  0x28   :  { %p696_p4 = pnand %p694_p3, %p691_p2 }
  0x2a   :  { %699 = shalt.err (!%p696_p4)
}
  0x2b   :  { %s700_s14 = scalar_lea.vmem %s46_s18, 2048  ;;  %p705_p6 = scmp.lt.s32.totalorder %s46_s18, %s46_s18 }
  0x2c   :  { %p701_p5 = scmp.ne.s32.totalorder %s46_s18, %s700_s14  ;;  %p706_p7 = scmp.lt.s32.totalorder %s700_s14, %s700_s14 }
  0x2e   :  { %p707_p8 = por %p706_p7, %p705_p6 }
  0x30   :  { %p708_p9 = pnand %p707_p8, %p701_p5 }
  0x32   :  { %711 = shalt.err (!%p708_p9)
}
  0x33   :  { %51 = dma.hbm_to_vmem [thread:$0]  %s922_s3, 2048, %s46_s18, [#allocation6], %s765_s11, %s765_s11, %s766_s12  }
  0x34   :  { %s769_s16 = smov [#allocation8]   ;;  %s712_s21 = scalar_lea.hbm %s924_s5, 2048 }
  0x35   :  { %s59_s17 = sshll.u32 %s769_s16, 4  ;;  %p713_p10 = scmp.ne.s32.totalorder %s924_s5, %s712_s21  ;;  %s60_s17 = int_to_ptr.vmem [resolvable:$true] %s59_s17 }
  0x36   :  { %p716_p11 = scmp.lt.u32.totalorder %s712_s21, %s924_s5 }
  0x38   :  { %p718_p12 = pnand %p716_p11, %p713_p10 }
  0x3a   :  { %721 = shalt.err (!%p718_p12)
}
  0x3b   :  { %s722_s1 = scalar_lea.vmem %s60_s17, 2048  ;;  %p727_p0 = scmp.lt.s32.totalorder %s60_s17, %s60_s17 }
  0x3c   :  { %p723_p13 = scmp.ne.s32.totalorder %s60_s17, %s722_s1  ;;  %p728_p1 = scmp.lt.s32.totalorder %s722_s1, %s722_s1 }
  0x3e   :  { %p729_p2 = por %p728_p1, %p727_p0 }
  0x40   :  { %p730_p3 = pnand %p729_p2, %p723_p13 }
  0x42   :  { %733 = shalt.err (!%p730_p3)
}
  0x43   :  { %65 = dma.hbm_to_vmem [thread:$0]  %s924_s5, 2048, %s60_s17, [#allocation9], %s765_s11, %s765_s11, %s766_s12  }
  0x44   :  { %756 = dma.done.wait [#allocation3], 128  }
  0x45   :  { %757 = vsyncadd [#allocation3], 4294967168 }
  0x46   :  { %758 = dma.done.wait [#allocation6], 4096  }
  0x47   :  { %759 = vsyncadd [#allocation6], 4294963200 }
  0x48   :  { %760 = dma.done.wait [#allocation9], 2048  }
  0x49   :  { %761 = vsyncadd [#allocation9], 4294965248  ;;  %v770_v0 = vmov 0.0|0.0   ;;  %vm771_vm0 = vmmov 0   ;;  %v772_v1 = vmov 0.0   ;;  %v81_v2 = vld [vmem:[#allocation5] sm:$0xff] }
  0x4a   :  { %552 = vmatprep.subr.bf16.mxu0 %v770_v0  ;;  %479 = vmatprep.mubr.msk.f32.mxu0 %vm771_vm0, %v772_v1  ;;  %v82_v3 = vld [vmem:[#allocation5 + $0x8] sm:$0xff]  ;;  %v83_v4 = vld [vmem:[#allocation5 + $0x10] sm:$0xff]  ;;  %v84_v6 = vld [vmem:[#allocation5 + $0x18] sm:$0xff] }
  0x4b   :  { %576 = vmatprep.subr.bf16.mxu1 %v770_v0  ;;  %514 = vmatprep.mubr.msk.f32.mxu1 %vm771_vm0, %v772_v1  ;;  %v553_v5 = vpack.c.bf16 %v82_v3, %v81_v2  ;;  %v556_v7 = vpack.c.bf16 %v84_v6, %v83_v4  ;;  %v85_v8 = vld [vmem:[#allocation5 + $0x20] sm:$0xff]  ;;  %v86_v9 = vld [vmem:[#allocation5 + $0x28] sm:$0xff]  ;;  %v87_v11 = vld [vmem:[#allocation5 + $0x30] sm:$0xff] }
  0x4c   :  { %v559_v10 = vpack.c.bf16 %v86_v9, %v85_v8  ;;  %v88_v12 = vld [vmem:[#allocation5 + $0x38] sm:$0xff]  ;;  %v89_v14 = vld [vmem:[#allocation5 + $0x40] sm:$0xff]  ;;  %v90_v15 = vld [vmem:[#allocation5 + $0x48] sm:$0xff] }
  0x4d   :  { %554 = vmatpush3.bf16.msra.mxu0 %v553_v5  ;;  %v562_v13 = vpack.c.bf16 %v88_v12, %v87_v11  ;;  %v565_v16 = vpack.c.bf16 %v90_v15, %v89_v14  ;;  %v91_v17 = vld [vmem:[#allocation5 + $0x50] sm:$0xff]  ;;  %v92_v18 = vld [vmem:[#allocation5 + $0x58] sm:$0xff]  ;;  %v93_v20 = vld [vmem:[#allocation5 + $0x60] sm:$0xff] }
  0x4e   :  { %555 = vmatprep.subr.bf16.mxu0 %v770_v0  ;;  %v568_v19 = vpack.c.bf16 %v92_v18, %v91_v17  ;;  %v94_v21 = vld [vmem:[#allocation5 + $0x68] sm:$0xff]  ;;  %v95_v23 = vld [vmem:[#allocation5 + $0x70] sm:$0xff]  ;;  %v96_v24 = vld [vmem:[#allocation5 + $0x78] sm:$0xff] }
  0x4f   :  { %v571_v22 = vpack.c.bf16 %v94_v21, %v93_v20  ;;  %v574_v25 = vpack.c.bf16 %v96_v24, %v95_v23  ;;  %v80_v26 = vld [vmem:[#allocation2] sm:$0xff]  ;;  %v179_v27 = vld [vmem:[#allocation7] sm:$0xff]  ;;  %v180_v28 = vld [vmem:[#allocation7 + $0x8] sm:$0xff] }
  0x50   :  { %v577_v29 = vpack.c.bf16 %v180_v28, %v179_v27  ;;  %v181_v30 = vld [vmem:[#allocation7 + $0x10] sm:$0xff]  ;;  %v182_v31 = vld [vmem:[#allocation7 + $0x18] sm:$0xff]  ;;  %v183_v33 = vld [vmem:[#allocation7 + $0x20] sm:$0xff] }
  0x51   :  { %557 = vmatpush3.bf16.msra.mxu0 %v556_v7  ;;  %v580_v32 = vpack.c.bf16 %v182_v31, %v181_v30  ;;  %v184_v34 = vld [vmem:[#allocation7 + $0x28] sm:$0xff]  ;;  %v185_v36 = vld [vmem:[#allocation7 + $0x30] sm:$0xff]  ;;  %v186_v37 = vld [vmem:[#allocation7 + $0x38] sm:$0xff] }
  0x52   :  { %558 = vmatprep.subr.bf16.mxu0 %v770_v0  ;;  %578 = vmatpush3.bf16.msra.mxu1 %v577_v29  ;;  %v583_v35 = vpack.c.bf16 %v184_v34, %v183_v33  ;;  %v586_v38 = vpack.c.bf16 %v186_v37, %v185_v36  ;;  %v187_v39 = vld [vmem:[#allocation7 + $0x40] sm:$0xff]  ;;  %v188_v40 = vld [vmem:[#allocation7 + $0x48] sm:$0xff]  ;;  %v189_v42 = vld [vmem:[#allocation7 + $0x50] sm:$0xff] }
  0x53   :  { %579 = vmatprep.subr.bf16.mxu1 %v770_v0  ;;  %v589_v41 = vpack.c.bf16 %v188_v40, %v187_v39  ;;  %v190_v43 = vld [vmem:[#allocation7 + $0x58] sm:$0xff]  ;;  %v191_v45 = vld [vmem:[#allocation7 + $0x60] sm:$0xff]  ;;  %v192_v46 = vld [vmem:[#allocation7 + $0x68] sm:$0xff] }
  0x54   :  { %v592_v44 = vpack.c.bf16 %v190_v43, %v189_v42  ;;  %v595_v47 = vpack.c.bf16 %v192_v46, %v191_v45  ;;  %v193_v48 = vld [vmem:[#allocation7 + $0x70] sm:$0xff]  ;;  %v194_v49 = vld [vmem:[#allocation7 + $0x78] sm:$0xff]  ;;  %v277_v60 = vld [vmem:[#allocation8] sm:$0xff] }
  0x55   :  { %560 = vmatpush3.bf16.msra.mxu0 %v559_v10  ;;  %v598_v50 = vpack.c.bf16 %v194_v49, %v193_v48  ;;  %v393_v51 = vld [vmem:[%s921_s2] ss:$0 sm:$0xff]  ;;  %v278_v61 = vld [vmem:[#allocation8 + $0x8] sm:$0xff]  ;;  %v279_v63 = vld [vmem:[#allocation8 + $0x10] sm:$0xff] }
  0x56   :  { %561 = vmatprep.subr.bf16.mxu0 %v770_v0  ;;  %581 = vmatpush3.bf16.msra.mxu1 %v580_v32  ;;  %v601_v62 = vpack.c.bf16 %v278_v61, %v277_v60  ;;  %v281_v3 = vld [vmem:[#allocation8 + $0x20] sm:$0xff]  ;;  %v282_v4 = vld [vmem:[#allocation8 + $0x28] sm:$0xff]  ;;  %v283_v6 = vld [vmem:[#allocation8 + $0x30] sm:$0xff] }
  0x57   :  { %582 = vmatprep.subr.bf16.mxu1 %v770_v0  ;;  %v607_v5 = vpack.c.bf16 %v282_v4, %v281_v3  ;;  %v284_v7 = vld [vmem:[#allocation8 + $0x38] sm:$0xff]  ;;  %v285_v9 = vld [vmem:[#allocation8 + $0x40] sm:$0xff]  ;;  %v286_v10 = vld [vmem:[#allocation8 + $0x48] sm:$0xff] }
  0x58   :  { %v610_v8 = vpack.c.bf16 %v284_v7, %v283_v6  ;;  %v613_v11 = vpack.c.bf16 %v286_v10, %v285_v9  ;;  %v287_v12 = vld [vmem:[#allocation8 + $0x50] sm:$0xff]  ;;  %v289_v15 = vld [vmem:[#allocation8 + $0x60] sm:$0xff]  ;;  %v394_v21 = vld [vmem:[%s923_s4] ss:$0 sm:$0xff]  ;;  %s773_s4 = smov [#allocation10]  }
  0x59   :  { %563 = vmatpush3.bf16.msra.mxu0 %v562_v13  ;;  %v288_v13 = vld [vmem:[#allocation8 + $0x58] sm:$0xff]  ;;  %v291_v18 = vld [vmem:[#allocation8 + $0x70] sm:$0xff]  ;;  %s382_s28 = sshll.u32 %s773_s4, 4  ;;  %s383_s28 = int_to_ptr.vmem [resolvable:$true] %s382_s28 }
  0x5a   :  { %564 = vmatprep.subr.bf16.mxu0 %v770_v0  ;;  %584 = vmatpush3.bf16.msra.mxu1 %v583_v35  ;;  %v616_v14 = vpack.c.bf16 %v288_v13, %v287_v12  ;;  %s734_s29 = scalar_lea.vmem %s383_s28, 128  ;;  %p739_p5 = scmp.lt.s32.totalorder %s383_s28, %s383_s28 }
  0x5b   :  { %585 = vmatprep.subr.bf16.mxu1 %v770_v0  ;;  %p735_p4 = scmp.ne.s32.totalorder %s383_s28, %s734_s29  ;;  %p740_p6 = scmp.lt.s32.totalorder %s734_s29, %s734_s29 }
  0x5d   :  { %566 = vmatpush3.bf16.msra.mxu0 %v565_v16  ;;  %v290_v16 = vld [vmem:[#allocation8 + $0x68] sm:$0xff]  ;;  %p741_p7 = por %p740_p6, %p739_p5 }
  0x5e   :  { %567 = vmatprep.subr.bf16.mxu0 %v770_v0  ;;  %587 = vmatpush3.bf16.msra.mxu1 %v586_v38  ;;  %v619_v17 = vpack.c.bf16 %v290_v16, %v289_v15 }
  0x5f   :  { %588 = vmatprep.subr.bf16.mxu1 %v770_v0  ;;  %p742_p8 = pnand %p741_p7, %p735_p4 }
  0x61   :  { %569 = vmatpush3.bf16.msra.mxu0 %v568_v19  ;;  %v292_v19 = vld [vmem:[#allocation8 + $0x78] sm:$0xff] }
  0x62   :  { %570 = vmatprep.subr.bf16.mxu0 %v770_v0  ;;  %590 = vmatpush3.bf16.msra.mxu1 %v589_v41  ;;  %v622_v20 = vpack.c.bf16 %v292_v19, %v291_v18 }
  0x63   :  { %591 = vmatprep.subr.bf16.mxu1 %v770_v0 }
  0x65   :  { %572 = vmatpush3.bf16.msra.mxu0 %v571_v22 }
  0x66   :  { %573 = vmatprep.subr.bf16.mxu0 %v770_v0  ;;  %593 = vmatpush3.bf16.msra.mxu1 %v592_v44 }
  0x67   :  { %594 = vmatprep.subr.bf16.mxu1 %v770_v0 }
  0x69   :  { %575 = vmatpush3.bf16.msra.mxu0 %v574_v25 }
  0x6a   :  { %600 = vmatprep.subr.bf16.mxu0 %v770_v0  ;;  %596 = vmatpush3.bf16.msra.mxu1 %v595_v47 }
  0x6b   :  { %597 = vmatprep.subr.bf16.mxu1 %v770_v0 }
  0x6c   :  { %480 = vmatmul.mubr.f32.vlgmr.msra.gmra.mrb[0].mxu0 %v80_v26 }
  0x6d   :  { %549 = vmatprep.mubr.msk.f32.mxu0 %vm771_vm0, %v772_v1  ;;  %602 = vmatpush3.bf16.msra.mxu0 %v601_v62  ;;  %v280_v1 = vld [vmem:[#allocation8 + $0x18] sm:$0xff] }
  0x6e   :  { %599 = vmatpush3.bf16.msra.mxu1 %v598_v50  ;;  %603 = vmatprep.subr.bf16.mxu0 %v770_v0  ;;  %v604_v2 = vpack.c.bf16 %v280_v1, %v279_v63 }
  0x71   :  { %605 = vmatpush3.bf16.msra.mxu0 %v604_v2 }
  0x72   :  { %606 = vmatprep.subr.bf16.mxu0 %v770_v0 }
  0x75   :  { %608 = vmatpush3.bf16.msra.mxu0 %v607_v5 }
  0x76   :  { %609 = vmatprep.subr.bf16.mxu0 %v770_v0 }
  0x79   :  { %611 = vmatpush3.bf16.msra.mxu0 %v610_v8 }
  0x7a   :  { %612 = vmatprep.subr.bf16.mxu0 %v770_v0 }
  0x7d   :  { %614 = vmatpush3.bf16.msra.mxu0 %v613_v11 }
  0x7e   :  { %615 = vmatprep.subr.bf16.mxu0 %v770_v0 }
  0x81   :  { %617 = vmatpush3.bf16.msra.mxu0 %v616_v14 }
  0x82   :  { %618 = vmatprep.subr.bf16.mxu0 %v770_v0 }
  0x85   :  { %620 = vmatpush3.bf16.msra.mxu0 %v619_v17 }
  0x86   :  { %621 = vmatprep.subr.bf16.mxu0 %v770_v0  ;;  %v395_v0 = vld [vmem:[%s925_s6] ss:$0 sm:$0xff] }
  0x89   :  { %623 = vmatpush3.bf16.msra.mxu0 %v622_v20 }
 0x13f   :  { %v170_v52 = vpop.f32.mrb[0].mxu0 }
 0x140   :  { %v171_v53 = vadd.f32 %v393_v51, %v170_v52  ;;  %v481_v54 = vpop.f32.mrb[1].mxu0 }
 0x142   :  { %v174_v55 = vsub.f32 0.0, %v171_v53 }
 0x144   :  { %v175_v56 = vmul.f32 1.442695, %v174_v55 }
 0x146   :  { %634 = vpow2.f32 %v175_v56 }
 0x150   :  { %v635_v57 = vpop.eup %634 }
 0x151   :  { %v177_v58 = vadd.f32 1.0, %v635_v57 }
 0x153   :  { %636 = vrcp.f32 %v177_v58 }
 0x15d   :  { %v637_v59 = vpop.eup %636 }
 0x15e   :  { %515 = vmatmul.mubr.f32.vlgmr.msra.gmra.mrb[0].mxu1 %v637_v59 }
 0x231   :  { %v268_v22 = vpop.f32.mrb[0].mxu1 }
 0x232   :  { %v269_v23 = vadd.f32 %v394_v21, %v268_v22  ;;  %v516_v24 = vpop.f32.mrb[1].mxu1 }
 0x234   :  { %v272_v25 = vsub.f32 0.0, %v269_v23 }
 0x236   :  { %v273_v26 = vmul.f32 1.442695, %v272_v25 }
 0x238   :  { %638 = vpow2.f32 %v273_v26 }
 0x242   :  { %v639_v27 = vpop.eup %638 }
 0x243   :  { %v275_v28 = vadd.f32 1.0, %v639_v27 }
 0x245   :  { %640 = vrcp.f32 %v275_v28 }
 0x24f   :  { %v641_v29 = vpop.eup %640 }
 0x250   :  { %550 = vmatmul.mubr.f32.vlgmr.msra.gmra.mrb[2].mxu0 %v641_v29 }
 0x323   :  { %v366_v30 = vpop.f32.mrb[2].mxu0 }
 0x324   :  { %v367_v31 = vadd.f32 %v395_v0, %v366_v30  ;;  %v551_v32 = vpop.f32.mrb[3].mxu0 }
 0x326   :  { %v370_v33 = vsub.f32 0.0, %v367_v31 }
 0x328   :  { %v371_v34 = vmul.f32 1.442695, %v370_v33 }
 0x32a   :  { %642 = vpow2.f32 %v371_v34 }
 0x334   :  { %v643_v35 = vpop.eup %642 }
 0x335   :  { %v373_v36 = vadd.f32 1.0, %v643_v35 }
 0x337   :  { %644 = vrcp.f32 %v373_v36 }
 0x341   :  { %v645_v37 = vpop.eup %644 }
 0x342   :  { %375 = vst [vmem:[#allocation10] sm:$0xff] %v645_v37 }
 0x343   :  { %745 = shalt.err (!%p742_p8)
}
 0x344   :  { %s746_s8 = scalar_lea.hbm %s926_s7, 128 }
 0x345   :  { %p747_p9 = scmp.ne.s32.totalorder %s926_s7, %s746_s8  ;;  %p750_p10 = scmp.lt.u32.totalorder %s746_s8, %s926_s7 }
 0x347   :  { %p752_p11 = pnand %p750_p10, %p747_p9 }
 0x349   :  { %755 = shalt.err (!%p752_p11)
}
 0x34a   :  { %385 = dma.vmem_to_hbm [thread:$0]  %s383_s28, 128, %s926_s7, [#allocation4]  }
 0x34b   :  { %762 = dma.done.wait [#allocation4], 128  }
 0x34c   :  { %763 = vsyncadd [#allocation4], 4294967168 }
 0x34d   :  { %389 = vsyncpa [#allocation3], 1 }
 0x34e   :  { %390 = vsyncpa [#allocation6], 1 }
 0x34f   :  { %391 = vsyncpa [#allocation9], 1 }
 0x350   :  { %392 = vsyncpa [#allocation4], 1 }

</bundles_post_ra>
